<compile_context>
chip_gen: v5e
topology: v5e:2x2
jax: 0.10.0
libtpu: 0.0.40
codegen_flags: <defaults>
</compile_context>

<pallas_src>
import jax
import jax.numpy as jnp
from jax.experimental import pallas as pl
from jax.experimental.pallas import tpu as pltpu


# ----------------------------- Pallas kernel ---------------------------------

def lstm_kernel(xs_ref, wih_ref, whh_ref, bias_ref, wo_ref, bo_ref, out_ref):
    """Whole LSTM + output Linear in one gridless kernel invocation."""
    TB = xs_ref.shape[0]
    B = out_ref.shape[0]
    T = TB // B
    H4 = whh_ref.shape[1]
    H = H4 // 4

    # (1) Input projection for every time step in a single MXU pass (f32 accumulation).
    #     The fused, 0.5-pre-scaled LSTM bias is added once.  Kept as a value (8 vregs at this
    #     shape) -- no VMEM scratch store/load on the serial path.
    xw = jnp.dot(xs_ref[...], wih_ref[...],
                 preferred_element_type=jnp.float32) + bias_ref[...]        # (T*B, 4H)

    # --- loop-invariant values hoisted out of the recurrence ---
    whh = whh_ref[...]                                    # (4H, 4H); rows [H, 4H) are zero
    lane = jax.lax.broadcasted_iota(jnp.int32, (B, H4), 1)
    g_mask = (lane >= 2 * H) & (lane < 3 * H)             # tanh-only lanes (the g gate)
    # pltpu.roll is a cyclic lane rotation (XLU, free slot).  A shift of 2H is self-inverse so
    # it pairs i<->g regardless of rotation direction; for the +/-H shifts we build a selection
    # mask from a rolled lane-iota so the f/o pairing is direction-agnostic (two cheap VPU
    # selects that also guard against silent gate misalignment if the roll direction differs).
    src_h = pltpu.roll(lane, H, axis=1)                   # source lane landing on each lane
    f_from_h = (src_h >= H) & (src_h < 2 * H)             # True where roll-by-H carries f

    h = jnp.zeros((B, H4), jnp.float32)
    c = jnp.zeros((B, H4), jnp.float32)
    cdt = whh.dtype                                       # matmul operand dtype (bf16 or f32)
    for t in range(T):                                    # static unroll; T is small & static
        # gates is exact in ALL lanes: xw is exact and dead lanes of h hit zero rows of whh.
        gates = xw[t * B:(t + 1) * B, :] + jnp.dot(
            h.astype(cdt), whh, preferred_element_type=jnp.float32)         # (B, 4H)
        # ONE full-width tanh (EUP); sigmoid lanes were pre-scaled by 0.5 wrapper-side, so
        # sigmoid(z) == 0.5 * tanh(z/2) + 0.5 costs only a VPU fma.
        t_act = jnp.tanh(gates)
        act = jnp.where(g_mask, t_act, 0.5 * t_act + 0.5)                   # [i | f | g | o]
        g_al = pltpu.roll(act, 2 * H, axis=1)             # lanes [0, H): g
        r_h = pltpu.roll(act, H, axis=1)
        r_3h = pltpu.roll(act, 3 * H, axis=1)
        f_al = jnp.where(f_from_h, r_h, r_3h)             # lanes [0, H): f
        o_al = jnp.where(f_from_h, r_3h, r_h)             # lanes [0, H): o
        c = f_al * c + act * g_al                         # lanes [0, H): f*c + i*g
        h = o_al * jnp.tanh(c)                            # lanes [0, H): o*tanh(c_new)
        # lanes [H, 4H) carry bounded don't-care values that the zero-padded weights discard.

    # Final Linear on h_n; rows [H, 4H) of wo are zero so the dead lanes drop out.
    out_ref[...] = (jnp.dot(h, wo_ref[...], preferred_element_type=jnp.float32)
                    + bo_ref[...]).astype(out_ref.dtype)


# ------------------------------ JAX wrapper -----------------------------------

def lstm_forward(x, params, input_size, *, compute_dtype=jnp.bfloat16):
    """Mirror of LSTM.forward: x.view(B,-1,I) -> LSTM -> h_n -> Linear -> (B, O)."""
    w_ih, w_hh, b_ih, b_hh, w_o, b_o = params
    B = x.shape[0]
    xb = x.reshape(B, -1, input_size)                     # (B, T, I)
    T = xb.shape[1]
    I = input_size
    H = w_hh.shape[1]
    O = w_o.shape[0]
    H4 = 4 * H
    # The padded full-vreg gate layout (and the roll-based alignment) targets 4H <= 128; a
    # production H needs lane-block-tiled gates and an unpadded (H, 4H) recurrent weight.
    assert H4 <= 128, f"4*hidden_size={H4} > 128: re-tile the gate layout before scaling H"

    # Time-major, flattened to (T*B, I) so the whole input projection is one matmul.
    xs = jnp.transpose(xb, (1, 0, 2)).reshape(T * B, I).astype(compute_dtype)

    # Pre-scale the sigmoid gates (i, f, o) by 0.5 so the kernel needs a single gate tanh:
    # sigmoid(z) = 0.5 * tanh(z/2) + 0.5.  The g gate keeps scale 1.  (x0.5 is exact in bf16.)
    idx = jnp.arange(H4)
    gate_scale = jnp.where((idx >= 2 * H) & (idx < 3 * H), 1.0, 0.5).astype(jnp.float32)

    wih_t = (jnp.transpose(w_ih) * gate_scale[None, :]).astype(compute_dtype)      # (I, 4H)
    # Zero-pad the recurrent / output weights to 4H rows so the kernel can keep h as a full
    # (B, 4H) vreg: dead lanes [H, 4H) of h multiply zero rows and never affect the result.
    whh_pad = jnp.zeros((H4, H4), jnp.float32).at[:H, :].set(
        jnp.transpose(w_hh) * gate_scale[None, :]).astype(compute_dtype)           # (4H, 4H)
    wo_pad = jnp.zeros((H4, O), jnp.float32).at[:H, :].set(jnp.transpose(w_o))     # (4H, O)
    bias = ((b_ih + b_hh) * gate_scale).reshape(1, H4).astype(jnp.float32)         # fused bias
    bo = b_o.reshape(1, O).astype(jnp.float32)

    out = pl.pallas_call(
        lstm_kernel,
        out_shape=jax.ShapeDtypeStruct((B, O), x.dtype),
        in_specs=[pl.BlockSpec(memory_space=pltpu.MemorySpace.VMEM)] * 6,
        out_specs=pl.BlockSpec(memory_space=pltpu.MemorySpace.VMEM),
        compiler_params=pltpu.CompilerParams(
            # Everything is resident in VMEM; raise the scoped limit above v5e's 16 MiB default
            # (a no-op at this toy footprint, required once T / B grow).
            vmem_limit_bytes=32 * 1024 * 1024),
    )(xs, wih_t, whh_pad, bias, wo_pad, bo)
    return out.reshape(B, -1)


# --------------------------- pure-JAX reference --------------------------------

def lstm_reference(x, params, input_size):
    w_ih, w_hh, b_ih, b_hh, w_o, b_o = params
    B = x.shape[0]
    x = x.reshape(B, -1, input_size)
    H = w_hh.shape[1]
    h = jnp.zeros((B, H), jnp.float32)
    c = jnp.zeros((B, H), jnp.float32)

    def step(carry, x_t):
        h, c = carry
        gates = x_t @ w_ih.T + h @ w_hh.T + b_ih + b_hh
        i = jax.nn.sigmoid(gates[:, 0 * H:1 * H])
        f = jax.nn.sigmoid(gates[:, 1 * H:2 * H])
        g = jnp.tanh(gates[:, 2 * H:3 * H])
        o = jax.nn.sigmoid(gates[:, 3 * H:4 * H])
        c = f * c + i * g
        h = o * jnp.tanh(c)
        return (h, c), None

    (h, _), _ = jax.lax.scan(step, (h, c), jnp.transpose(x, (1, 0, 2)))
    return (h @ w_o.T + b_o).reshape(B, -1)


# ----------------------------------- main --------------------------------------

if __name__ == "__main__":
    INPUT_SIZE, HIDDEN_SIZE, OUTPUT_SIZE = 16, 32, 8
    B, T = 8, 8   # small shapes: batch=8, seq=8

    key = jax.random.PRNGKey(0)
    ks = jax.random.split(key, 7)
    bound = 1.0 / (HIDDEN_SIZE ** 0.5)

    # nn.LSTM parameters (single layer): weight_ih_l0 (4H, I), weight_hh_l0 (4H, H),
    # bias_ih_l0 (4H,), bias_hh_l0 (4H,); nn.Linear: (O, H) weight, (O,) bias.
    w_ih = jax.random.uniform(ks[0], (4 * HIDDEN_SIZE, INPUT_SIZE), jnp.float32, -bound, bound)
    w_hh = jax.random.uniform(ks[1], (4 * HIDDEN_SIZE, HIDDEN_SIZE), jnp.float32, -bound, bound)
    b_ih = jax.random.uniform(ks[2], (4 * HIDDEN_SIZE,), jnp.float32, -bound, bound)
    b_hh = jax.random.uniform(ks[3], (4 * HIDDEN_SIZE,), jnp.float32, -bound, bound)
    w_o = jax.random.uniform(ks[4], (OUTPUT_SIZE, HIDDEN_SIZE), jnp.float32, -bound, bound)
    b_o = jax.random.uniform(ks[5], (OUTPUT_SIZE,), jnp.float32, -bound, bound)
    params = (w_ih, w_hh, b_ih, b_hh, w_o, b_o)

    # forward() accepts any (B, ...) tensor and views it to (B, -1, input_size)
    x = jax.random.normal(ks[6], (B, T, INPUT_SIZE), jnp.float32)

    ref = lstm_reference(x, params, INPUT_SIZE)

    # Strict structural check: f32 MXU operands must match the exact reference tightly.
    out_f32 = jax.block_until_ready(
        lstm_forward(x, params, INPUT_SIZE, compute_dtype=jnp.float32))
    assert out_f32.shape == (B, OUTPUT_SIZE), out_f32.shape
    assert jnp.allclose(out_f32, ref, atol=5e-4, rtol=5e-4), "f32 kernel mismatch vs reference"

    # Production path (v6e/v7x perf recommendation): bf16 MXU operands, f32 accumulation.
    # Looser tolerance covers the expected bf16 operand-rounding drift over the 8-step recurrence.
    out = jax.block_until_ready(
        lstm_forward(x, params, INPUT_SIZE, compute_dtype=jnp.bfloat16))
    assert out.shape == (B, OUTPUT_SIZE), out.shape
    assert jnp.allclose(out, ref, atol=5e-2, rtol=5e-2), "bf16 kernel mismatch vs reference"

    print("KERNEL_OK")
</pallas_src>

<mosaic_0001>
module attributes {stable_mosaic.version = 11 : i64} {
  func.func @lstm_kernel(%arg0: memref<64x16xf32, #tpu.memory_space<vmem>>, %arg1: memref<16x128xf32, #tpu.memory_space<vmem>>, %arg2: memref<128x128xf32, #tpu.memory_space<vmem>>, %arg3: memref<1x128xf32, #tpu.memory_space<vmem>>, %arg4: memref<128x8xf32, #tpu.memory_space<vmem>>, %arg5: memref<1x8xf32, #tpu.memory_space<vmem>>, %arg6: memref<8x8xf32, #tpu.memory_space<vmem>>) attributes {dimension_semantics = [], scalar_prefetch = 0 : i64, scratch_operands = 0 : i64, tpu.core_type = #tpu.core_type<tc>} {
    %c0 = arith.constant 0 : index
    %c0_0 = arith.constant 0 : index
    %0 = vector.load %arg0[%c0, %c0_0] : memref<64x16xf32, #tpu.memory_space<vmem>>, vector<64x16xf32>
    %c0_1 = arith.constant 0 : index
    %c0_2 = arith.constant 0 : index
    %1 = vector.load %arg1[%c0_1, %c0_2] : memref<16x128xf32, #tpu.memory_space<vmem>>, vector<16x128xf32>
    %cst = arith.constant dense<0.000000e+00> : vector<64x128xf32>
    %2 = tpu.matmul %0, %1, %cst {dimension_numbers = #tpu.dot_dimension_numbers<[1], [0], [0], [1], [0, 0, 1, 1], [], []>} : vector<64x16xf32>, vector<16x128xf32>, vector<64x128xf32> -> vector<64x128xf32>
    %c0_3 = arith.constant 0 : index
    %c0_4 = arith.constant 0 : index
    %3 = vector.load %arg3[%c0_3, %c0_4] : memref<1x128xf32, #tpu.memory_space<vmem>>, vector<1x128xf32>
    %4 = vector.broadcast %3 : vector<1x128xf32> to vector<64x128xf32>
    %5 = arith.addf %2, %4 : vector<64x128xf32>
    %c0_5 = arith.constant 0 : index
    %c0_6 = arith.constant 0 : index
    %6 = vector.load %arg2[%c0_5, %c0_6] : memref<128x128xf32, #tpu.memory_space<vmem>>, vector<128x128xf32>
    %7 = tpu.iota {dimensions = array<i32: 1>} : vector<8x128xi32>
    %c64_i32 = arith.constant 64 : i32
    %8 = vector.broadcast %c64_i32 : i32 to vector<8x128xi32>
    %9 = arith.cmpi sge, %7, %8 : vector<8x128xi32>
    %c96_i32 = arith.constant 96 : i32
    %10 = vector.broadcast %c96_i32 : i32 to vector<8x128xi32>
    %11 = arith.cmpi slt, %7, %10 : vector<8x128xi32>
    %12 = arith.andi %9, %11 : vector<8x128xi1>
    %c32_i32 = arith.constant 32 : i32
    %13 = tpu.dynamic_rotate %7 by %c32_i32 dim 1 : vector<8x128xi32>, i32 -> vector<8x128xi32>
    %c32_i32_7 = arith.constant 32 : i32
    %14 = vector.broadcast %c32_i32_7 : i32 to vector<8x128xi32>
    %15 = arith.cmpi sge, %13, %14 : vector<8x128xi32>
    %c64_i32_8 = arith.constant 64 : i32
    %16 = vector.broadcast %c64_i32_8 : i32 to vector<8x128xi32>
    %17 = arith.cmpi slt, %13, %16 : vector<8x128xi32>
    %18 = arith.andi %15, %17 : vector<8x128xi1>
    %cst_9 = arith.constant 0.000000e+00 : f32
    %19 = vector.broadcast %cst_9 : f32 to vector<8x128xf32>
    %cst_10 = arith.constant 0.000000e+00 : f32
    %20 = vector.broadcast %cst_10 : f32 to vector<8x128xf32>
    %21 = vector.extract_strided_slice %5 {offsets = [0, 0], sizes = [8, 128], strides = [1, 1]} : vector<64x128xf32> to vector<8x128xf32>
    %cst_11 = arith.constant dense<0.000000e+00> : vector<8x128xf32>
    %22 = tpu.matmul %19, %6, %cst_11 {dimension_numbers = #tpu.dot_dimension_numbers<[1], [0], [0], [1], [0, 0, 1, 1], [], []>} : vector<8x128xf32>, vector<128x128xf32>, vector<8x128xf32> -> vector<8x128xf32>
    %23 = arith.addf %21, %22 : vector<8x128xf32>
    %24 = math.tanh %23 : vector<8x128xf32>
    %cst_12 = arith.constant 5.000000e-01 : f32
    %25 = vector.broadcast %cst_12 : f32 to vector<8x128xf32>
    %26 = arith.mulf %25, %24 : vector<8x128xf32>
    %cst_13 = arith.constant 5.000000e-01 : f32
    %27 = vector.broadcast %cst_13 : f32 to vector<8x128xf32>
    %28 = arith.addf %26, %27 : vector<8x128xf32>
    %29 = arith.select %12, %24, %28 : vector<8x128xi1>, vector<8x128xf32>
    %c64_i32_14 = arith.constant 64 : i32
    %30 = tpu.dynamic_rotate %29 by %c64_i32_14 dim 1 : vector<8x128xf32>, i32 -> vector<8x128xf32>
    %c32_i32_15 = arith.constant 32 : i32
    %31 = tpu.dynamic_rotate %29 by %c32_i32_15 dim 1 : vector<8x128xf32>, i32 -> vector<8x128xf32>
    %c96_i32_16 = arith.constant 96 : i32
    %32 = tpu.dynamic_rotate %29 by %c96_i32_16 dim 1 : vector<8x128xf32>, i32 -> vector<8x128xf32>
    %33 = arith.select %18, %31, %32 : vector<8x128xi1>, vector<8x128xf32>
    %34 = arith.select %18, %32, %31 : vector<8x128xi1>, vector<8x128xf32>
    %35 = arith.mulf %33, %20 : vector<8x128xf32>
    %36 = arith.mulf %29, %30 : vector<8x128xf32>
    %37 = arith.addf %35, %36 : vector<8x128xf32>
    %38 = math.tanh %37 : vector<8x128xf32>
    %39 = arith.mulf %34, %38 : vector<8x128xf32>
    %40 = vector.extract_strided_slice %5 {offsets = [8, 0], sizes = [8, 128], strides = [1, 1]} : vector<64x128xf32> to vector<8x128xf32>
    %cst_17 = arith.constant dense<0.000000e+00> : vector<8x128xf32>
    %41 = tpu.matmul %39, %6, %cst_17 {dimension_numbers = #tpu.dot_dimension_numbers<[1], [0], [0], [1], [0, 0, 1, 1], [], []>} : vector<8x128xf32>, vector<128x128xf32>, vector<8x128xf32> -> vector<8x128xf32>
    %42 = arith.addf %40, %41 : vector<8x128xf32>
    %43 = math.tanh %42 : vector<8x128xf32>
    %cst_18 = arith.constant 5.000000e-01 : f32
    %44 = vector.broadcast %cst_18 : f32 to vector<8x128xf32>
    %45 = arith.mulf %44, %43 : vector<8x128xf32>
    %cst_19 = arith.constant 5.000000e-01 : f32
    %46 = vector.broadcast %cst_19 : f32 to vector<8x128xf32>
    %47 = arith.addf %45, %46 : vector<8x128xf32>
    %48 = arith.select %12, %43, %47 : vector<8x128xi1>, vector<8x128xf32>
    %c64_i32_20 = arith.constant 64 : i32
    %49 = tpu.dynamic_rotate %48 by %c64_i32_20 dim 1 : vector<8x128xf32>, i32 -> vector<8x128xf32>
    %c32_i32_21 = arith.constant 32 : i32
    %50 = tpu.dynamic_rotate %48 by %c32_i32_21 dim 1 : vector<8x128xf32>, i32 -> vector<8x128xf32>
    %c96_i32_22 = arith.constant 96 : i32
    %51 = tpu.dynamic_rotate %48 by %c96_i32_22 dim 1 : vector<8x128xf32>, i32 -> vector<8x128xf32>
    %52 = arith.select %18, %50, %51 : vector<8x128xi1>, vector<8x128xf32>
    %53 = arith.select %18, %51, %50 : vector<8x128xi1>, vector<8x128xf32>
    %54 = arith.mulf %52, %37 : vector<8x128xf32>
    %55 = arith.mulf %48, %49 : vector<8x128xf32>
    %56 = arith.addf %54, %55 : vector<8x128xf32>
    %57 = math.tanh %56 : vector<8x128xf32>
    %58 = arith.mulf %53, %57 : vector<8x128xf32>
    %59 = vector.extract_strided_slice %5 {offsets = [16, 0], sizes = [8, 128], strides = [1, 1]} : vector<64x128xf32> to vector<8x128xf32>
    %cst_23 = arith.constant dense<0.000000e+00> : vector<8x128xf32>
    %60 = tpu.matmul %58, %6, %cst_23 {dimension_numbers = #tpu.dot_dimension_numbers<[1], [0], [0], [1], [0, 0, 1, 1], [], []>} : vector<8x128xf32>, vector<128x128xf32>, vector<8x128xf32> -> vector<8x128xf32>
    %61 = arith.addf %59, %60 : vector<8x128xf32>
    %62 = math.tanh %61 : vector<8x128xf32>
    %cst_24 = arith.constant 5.000000e-01 : f32
    %63 = vector.broadcast %cst_24 : f32 to vector<8x128xf32>
    %64 = arith.mulf %63, %62 : vector<8x128xf32>
    %cst_25 = arith.constant 5.000000e-01 : f32
    %65 = vector.broadcast %cst_25 : f32 to vector<8x128xf32>
    %66 = arith.addf %64, %65 : vector<8x128xf32>
    %67 = arith.select %12, %62, %66 : vector<8x128xi1>, vector<8x128xf32>
    %c64_i32_26 = arith.constant 64 : i32
    %68 = tpu.dynamic_rotate %67 by %c64_i32_26 dim 1 : vector<8x128xf32>, i32 -> vector<8x128xf32>
    %c32_i32_27 = arith.constant 32 : i32
    %69 = tpu.dynamic_rotate %67 by %c32_i32_27 dim 1 : vector<8x128xf32>, i32 -> vector<8x128xf32>
    %c96_i32_28 = arith.constant 96 : i32
    %70 = tpu.dynamic_rotate %67 by %c96_i32_28 dim 1 : vector<8x128xf32>, i32 -> vector<8x128xf32>
    %71 = arith.select %18, %69, %70 : vector<8x128xi1>, vector<8x128xf32>
    %72 = arith.select %18, %70, %69 : vector<8x128xi1>, vector<8x128xf32>
    %73 = arith.mulf %71, %56 : vector<8x128xf32>
    %74 = arith.mulf %67, %68 : vector<8x128xf32>
    %75 = arith.addf %73, %74 : vector<8x128xf32>
    %76 = math.tanh %75 : vector<8x128xf32>
    %77 = arith.mulf %72, %76 : vector<8x128xf32>
    %78 = vector.extract_strided_slice %5 {offsets = [24, 0], sizes = [8, 128], strides = [1, 1]} : vector<64x128xf32> to vector<8x128xf32>
    %cst_29 = arith.constant dense<0.000000e+00> : vector<8x128xf32>
    %79 = tpu.matmul %77, %6, %cst_29 {dimension_numbers = #tpu.dot_dimension_numbers<[1], [0], [0], [1], [0, 0, 1, 1], [], []>} : vector<8x128xf32>, vector<128x128xf32>, vector<8x128xf32> -> vector<8x128xf32>
    %80 = arith.addf %78, %79 : vector<8x128xf32>
    %81 = math.tanh %80 : vector<8x128xf32>
    %cst_30 = arith.constant 5.000000e-01 : f32
    %82 = vector.broadcast %cst_30 : f32 to vector<8x128xf32>
    %83 = arith.mulf %82, %81 : vector<8x128xf32>
    %cst_31 = arith.constant 5.000000e-01 : f32
    %84 = vector.broadcast %cst_31 : f32 to vector<8x128xf32>
    %85 = arith.addf %83, %84 : vector<8x128xf32>
    %86 = arith.select %12, %81, %85 : vector<8x128xi1>, vector<8x128xf32>
    %c64_i32_32 = arith.constant 64 : i32
    %87 = tpu.dynamic_rotate %86 by %c64_i32_32 dim 1 : vector<8x128xf32>, i32 -> vector<8x128xf32>
    %c32_i32_33 = arith.constant 32 : i32
    %88 = tpu.dynamic_rotate %86 by %c32_i32_33 dim 1 : vector<8x128xf32>, i32 -> vector<8x128xf32>
    %c96_i32_34 = arith.constant 96 : i32
    %89 = tpu.dynamic_rotate %86 by %c96_i32_34 dim 1 : vector<8x128xf32>, i32 -> vector<8x128xf32>
    %90 = arith.select %18, %88, %89 : vector<8x128xi1>, vector<8x128xf32>
    %91 = arith.select %18, %89, %88 : vector<8x128xi1>, vector<8x128xf32>
    %92 = arith.mulf %90, %75 : vector<8x128xf32>
    %93 = arith.mulf %86, %87 : vector<8x128xf32>
    %94 = arith.addf %92, %93 : vector<8x128xf32>
    %95 = math.tanh %94 : vector<8x128xf32>
    %96 = arith.mulf %91, %95 : vector<8x128xf32>
    %97 = vector.extract_strided_slice %5 {offsets = [32, 0], sizes = [8, 128], strides = [1, 1]} : vector<64x128xf32> to vector<8x128xf32>
    %cst_35 = arith.constant dense<0.000000e+00> : vector<8x128xf32>
    %98 = tpu.matmul %96, %6, %cst_35 {dimension_numbers = #tpu.dot_dimension_numbers<[1], [0], [0], [1], [0, 0, 1, 1], [], []>} : vector<8x128xf32>, vector<128x128xf32>, vector<8x128xf32> -> vector<8x128xf32>
    %99 = arith.addf %97, %98 : vector<8x128xf32>
    %100 = math.tanh %99 : vector<8x128xf32>
    %cst_36 = arith.constant 5.000000e-01 : f32
    %101 = vector.broadcast %cst_36 : f32 to vector<8x128xf32>
    %102 = arith.mulf %101, %100 : vector<8x128xf32>
    %cst_37 = arith.constant 5.000000e-01 : f32
    %103 = vector.broadcast %cst_37 : f32 to vector<8x128xf32>
    %104 = arith.addf %102, %103 : vector<8x128xf32>
    %105 = arith.select %12, %100, %104 : vector<8x128xi1>, vector<8x128xf32>
    %c64_i32_38 = arith.constant 64 : i32
    %106 = tpu.dynamic_rotate %105 by %c64_i32_38 dim 1 : vector<8x128xf32>, i32 -> vector<8x128xf32>
    %c32_i32_39 = arith.constant 32 : i32
    %107 = tpu.dynamic_rotate %105 by %c32_i32_39 dim 1 : vector<8x128xf32>, i32 -> vector<8x128xf32>
    %c96_i32_40 = arith.constant 96 : i32
    %108 = tpu.dynamic_rotate %105 by %c96_i32_40 dim 1 : vector<8x128xf32>, i32 -> vector<8x128xf32>
    %109 = arith.select %18, %107, %108 : vector<8x128xi1>, vector<8x128xf32>
    %110 = arith.select %18, %108, %107 : vector<8x128xi1>, vector<8x128xf32>
    %111 = arith.mulf %109, %94 : vector<8x128xf32>
    %112 = arith.mulf %105, %106 : vector<8x128xf32>
    %113 = arith.addf %111, %112 : vector<8x128xf32>
    %114 = math.tanh %113 : vector<8x128xf32>
    %115 = arith.mulf %110, %114 : vector<8x128xf32>
    %116 = vector.extract_strided_slice %5 {offsets = [40, 0], sizes = [8, 128], strides = [1, 1]} : vector<64x128xf32> to vector<8x128xf32>
    %cst_41 = arith.constant dense<0.000000e+00> : vector<8x128xf32>
    %117 = tpu.matmul %115, %6, %cst_41 {dimension_numbers = #tpu.dot_dimension_numbers<[1], [0], [0], [1], [0, 0, 1, 1], [], []>} : vector<8x128xf32>, vector<128x128xf32>, vector<8x128xf32> -> vector<8x128xf32>
    %118 = arith.addf %116, %117 : vector<8x128xf32>
    %119 = math.tanh %118 : vector<8x128xf32>
    %cst_42 = arith.constant 5.000000e-01 : f32
    %120 = vector.broadcast %cst_42 : f32 to vector<8x128xf32>
    %121 = arith.mulf %120, %119 : vector<8x128xf32>
    %cst_43 = arith.constant 5.000000e-01 : f32
    %122 = vector.broadcast %cst_43 : f32 to vector<8x128xf32>
    %123 = arith.addf %121, %122 : vector<8x128xf32>
    %124 = arith.select %12, %119, %123 : vector<8x128xi1>, vector<8x128xf32>
    %c64_i32_44 = arith.constant 64 : i32
    %125 = tpu.dynamic_rotate %124 by %c64_i32_44 dim 1 : vector<8x128xf32>, i32 -> vector<8x128xf32>
    %c32_i32_45 = arith.constant 32 : i32
    %126 = tpu.dynamic_rotate %124 by %c32_i32_45 dim 1 : vector<8x128xf32>, i32 -> vector<8x128xf32>
    %c96_i32_46 = arith.constant 96 : i32
    %127 = tpu.dynamic_rotate %124 by %c96_i32_46 dim 1 : vector<8x128xf32>, i32 -> vector<8x128xf32>
    %128 = arith.select %18, %126, %127 : vector<8x128xi1>, vector<8x128xf32>
    %129 = arith.select %18, %127, %126 : vector<8x128xi1>, vector<8x128xf32>
    %130 = arith.mulf %128, %113 : vector<8x128xf32>
    %131 = arith.mulf %124, %125 : vector<8x128xf32>
    %132 = arith.addf %130, %131 : vector<8x128xf32>
    %133 = math.tanh %132 : vector<8x128xf32>
    %134 = arith.mulf %129, %133 : vector<8x128xf32>
    %135 = vector.extract_strided_slice %5 {offsets = [48, 0], sizes = [8, 128], strides = [1, 1]} : vector<64x128xf32> to vector<8x128xf32>
    %cst_47 = arith.constant dense<0.000000e+00> : vector<8x128xf32>
    %136 = tpu.matmul %134, %6, %cst_47 {dimension_numbers = #tpu.dot_dimension_numbers<[1], [0], [0], [1], [0, 0, 1, 1], [], []>} : vector<8x128xf32>, vector<128x128xf32>, vector<8x128xf32> -> vector<8x128xf32>
    %137 = arith.addf %135, %136 : vector<8x128xf32>
    %138 = math.tanh %137 : vector<8x128xf32>
    %cst_48 = arith.constant 5.000000e-01 : f32
    %139 = vector.broadcast %cst_48 : f32 to vector<8x128xf32>
    %140 = arith.mulf %139, %138 : vector<8x128xf32>
    %cst_49 = arith.constant 5.000000e-01 : f32
    %141 = vector.broadcast %cst_49 : f32 to vector<8x128xf32>
    %142 = arith.addf %140, %141 : vector<8x128xf32>
    %143 = arith.select %12, %138, %142 : vector<8x128xi1>, vector<8x128xf32>
    %c64_i32_50 = arith.constant 64 : i32
    %144 = tpu.dynamic_rotate %143 by %c64_i32_50 dim 1 : vector<8x128xf32>, i32 -> vector<8x128xf32>
    %c32_i32_51 = arith.constant 32 : i32
    %145 = tpu.dynamic_rotate %143 by %c32_i32_51 dim 1 : vector<8x128xf32>, i32 -> vector<8x128xf32>
    %c96_i32_52 = arith.constant 96 : i32
    %146 = tpu.dynamic_rotate %143 by %c96_i32_52 dim 1 : vector<8x128xf32>, i32 -> vector<8x128xf32>
    %147 = arith.select %18, %145, %146 : vector<8x128xi1>, vector<8x128xf32>
    %148 = arith.select %18, %146, %145 : vector<8x128xi1>, vector<8x128xf32>
    %149 = arith.mulf %147, %132 : vector<8x128xf32>
    %150 = arith.mulf %143, %144 : vector<8x128xf32>
    %151 = arith.addf %149, %150 : vector<8x128xf32>
    %152 = math.tanh %151 : vector<8x128xf32>
    %153 = arith.mulf %148, %152 : vector<8x128xf32>
    %154 = vector.extract_strided_slice %5 {offsets = [56, 0], sizes = [8, 128], strides = [1, 1]} : vector<64x128xf32> to vector<8x128xf32>
    %cst_53 = arith.constant dense<0.000000e+00> : vector<8x128xf32>
    %155 = tpu.matmul %153, %6, %cst_53 {dimension_numbers = #tpu.dot_dimension_numbers<[1], [0], [0], [1], [0, 0, 1, 1], [], []>} : vector<8x128xf32>, vector<128x128xf32>, vector<8x128xf32> -> vector<8x128xf32>
    %156 = arith.addf %154, %155 : vector<8x128xf32>
    %157 = math.tanh %156 : vector<8x128xf32>
    %cst_54 = arith.constant 5.000000e-01 : f32
    %158 = vector.broadcast %cst_54 : f32 to vector<8x128xf32>
    %159 = arith.mulf %158, %157 : vector<8x128xf32>
    %cst_55 = arith.constant 5.000000e-01 : f32
    %160 = vector.broadcast %cst_55 : f32 to vector<8x128xf32>
    %161 = arith.addf %159, %160 : vector<8x128xf32>
    %162 = arith.select %12, %157, %161 : vector<8x128xi1>, vector<8x128xf32>
    %c64_i32_56 = arith.constant 64 : i32
    %163 = tpu.dynamic_rotate %162 by %c64_i32_56 dim 1 : vector<8x128xf32>, i32 -> vector<8x128xf32>
    %c32_i32_57 = arith.constant 32 : i32
    %164 = tpu.dynamic_rotate %162 by %c32_i32_57 dim 1 : vector<8x128xf32>, i32 -> vector<8x128xf32>
    %c96_i32_58 = arith.constant 96 : i32
    %165 = tpu.dynamic_rotate %162 by %c96_i32_58 dim 1 : vector<8x128xf32>, i32 -> vector<8x128xf32>
    %166 = arith.select %18, %164, %165 : vector<8x128xi1>, vector<8x128xf32>
    %167 = arith.select %18, %165, %164 : vector<8x128xi1>, vector<8x128xf32>
    %168 = arith.mulf %166, %151 : vector<8x128xf32>
    %169 = arith.mulf %162, %163 : vector<8x128xf32>
    %170 = arith.addf %168, %169 : vector<8x128xf32>
    %171 = math.tanh %170 : vector<8x128xf32>
    %172 = arith.mulf %167, %171 : vector<8x128xf32>
    %c0_59 = arith.constant 0 : index
    %c0_60 = arith.constant 0 : index
    %173 = vector.load %arg4[%c0_59, %c0_60] : memref<128x8xf32, #tpu.memory_space<vmem>>, vector<128x8xf32>
    %cst_61 = arith.constant dense<0.000000e+00> : vector<8x8xf32>
    %174 = tpu.matmul %172, %173, %cst_61 {dimension_numbers = #tpu.dot_dimension_numbers<[1], [0], [0], [1], [0, 0, 1, 1], [], []>} : vector<8x128xf32>, vector<128x8xf32>, vector<8x8xf32> -> vector<8x8xf32>
    %c0_62 = arith.constant 0 : index
    %c0_63 = arith.constant 0 : index
    %175 = vector.load %arg5[%c0_62, %c0_63] : memref<1x8xf32, #tpu.memory_space<vmem>>, vector<1x8xf32>
    %176 = vector.broadcast %175 : vector<1x8xf32> to vector<8x8xf32>
    %177 = arith.addf %174, %176 : vector<8x8xf32>
    %c0_64 = arith.constant 0 : index
    %c0_65 = arith.constant 0 : index
    %178 = vector.load %arg6[%c0_64, %c0_65] : memref<8x8xf32, #tpu.memory_space<vmem>>, vector<8x8xf32>
    tpu.vector_store %arg6[%c0_64, %c0_65], %177 {strides = array<i32>} : memref<8x8xf32, #tpu.memory_space<vmem>>, vector<8x8xf32>,
    return
  }
}

</mosaic_0001>

<bundles_post_ra>
// kernel: tpu_custom_call.1
= control target key start
LH: loop header
LB: loop body
LE: loop exit
PB: predicated region body
PF: predicated region fallthrough
CT: control target
= control target key end

     0   :  { %vm38_vm0 = vcmask 130048   ;;  %s999_s0 = inlined_call_operand.vmem [shape: f32[64,16], index: 0, kind: input, shape index: {}]   ;;  %s1000_s1 = inlined_call_operand.vmem [shape: f32[16,128], index: 1, kind: input, shape index: {}]   ;;  %s1001_s2 = inlined_call_operand.vmem [shape: f32[128,128], index: 2, kind: input, shape index: {}]   ;;  %s1002_s3 = inlined_call_operand.vmem [shape: f32[1,128], index: 3, kind: input, shape index: {}]   ;;  %s1003_s4 = inlined_call_operand.vmem [shape: f32[128,8], index: 4, kind: input, shape index: {}]   ;;  %s1004_s5 = inlined_call_operand.vmem [shape: f32[1,8], index: 5, kind: input, shape index: {}]   ;;  %s1005_s6 = inlined_call_operand.hbm [shape: f32[8,8], index: 6, kind: output, shape index: {}]  }
   0x1   :  { %v608_v0 = vld [vmem:[%s1001_s2 + $0x78] sm:$0xff]  ;;  %v613_v1 = vld [vmem:[%s1001_s2 + $0x70] sm:$0xff]  ;;  %v620_v2 = vld [vmem:[%s1001_s2 + $0x68] sm:$0xff] }
   0x2   :  { %130 = vmatpush.msra.mxu1 %v608_v0  ;;  %168 = vmatpush.msra.mxu2 %v608_v0  ;;  %v628_v3 = vld [vmem:[%s1001_s2 + $0x60] sm:$0xff]  ;;  %v33_v4 = vld [vmem:[%s1000_s1 + $0x8] sm:$0xff]  ;;  %v644_v7 = vld [vmem:[%s1001_s2 + $0x58] sm:$0xff] }
   0x3   :  { %206 = vmatpush.msra.mxu3 %v608_v0  ;;  %77 = vmatpush.msra.mxu0 %v33_v4  ;;  %v32_v5 = vld [vmem:[%s1000_s1] sm:$0xff] }
   0x4   :  { %131 = vmatpush.msra.mxu1 %v613_v1  ;;  %169 = vmatpush.msra.mxu2 %v613_v1  ;;  %v24_v6 = vld [vmem:[%s999_s0] sm:$0xff] }
   0x5   :  { %207 = vmatpush.msra.mxu3 %v613_v1  ;;  %78 = vmatpush.msra.mxu0 %v32_v5 }
   0x6   :  { %132 = vmatpush.msra.mxu1 %v620_v2  ;;  %170 = vmatpush.msra.mxu2 %v620_v2 }
   0x7   :  { %208 = vmatpush.msra.mxu3 %v620_v2 }
   0x8   :  { %133 = vmatpush.msra.mxu1 %v628_v3 }
   0x9   :  { %11 = vsyncpa [#allocation3], 0  ;;  %v652_v8 = vld [vmem:[%s1001_s2 + $0x50] sm:$0xff]  ;;  %492 = vmatmul.msk.f32.vlgmr.msra.gmra.mxu0 %vm38_vm0, %v24_v6  ;;  %171 = vmatpush.msra.mxu2 %v628_v3  ;;  %v661_v9 = vld [vmem:[%s1001_s2 + $0x48] sm:$0xff]  ;;  %v565_v19 = vmov 0.0   ;;  %v120_v20 = vlaneseq  ;;  %s568_s12 = smov 64  }
   0xa   :  { %134 = vmatpush.msra.mxu1 %v644_v7  ;;  %209 = vmatpush.msra.mxu3 %v628_v3  ;;  %v670_v10 = vld [vmem:[%s1001_s2 + $0x40] sm:$0xff]  ;;  %v679_v11 = vld [vmem:[%s1001_s2 + $0x38] sm:$0xff]  ;;  %v688_v12 = vld [vmem:[%s1001_s2 + $0x30] sm:$0xff]  ;;  %vm474_vm7 = vcmask 64512  }
   0xb   :  { %172 = vmatpush.msra.mxu2 %v644_v7  ;;  %358 = vmatpush.msrb.mxu0 %v608_v0  ;;  %v697_v13 = vld [vmem:[%s1001_s2 + $0x28] sm:$0xff]  ;;  %v706_v14 = vld [vmem:[%s1001_s2 + $0x20] sm:$0xff]  ;;  %v715_v15 = vld [vmem:[%s1001_s2 + $0x18] sm:$0xff]  ;;  %v121_v21 = vand.u32 127, %v120_v20 }
   0xc   :  { %135 = vmatpush.msra.mxu1 %v652_v8  ;;  %210 = vmatpush.msra.mxu3 %v644_v7  ;;  %v724_v16 = vld [vmem:[%s1001_s2 + $0x10] sm:$0xff]  ;;  %v733_v17 = vld [vmem:[%s1001_s2 + $0x8] sm:$0xff]  ;;  %v742_v18 = vld [vmem:[%s1001_s2] sm:$0xff]  ;;  %s566_s2 = smov 32  }
   0xd   :  { %173 = vmatpush.msra.mxu2 %v652_v8  ;;  %359 = vmatpush.msrb.mxu0 %v613_v1  ;;  %v827_v22 = vld [vmem:[%s1002_s3] ss:$0 sm:$0xff]  ;;  %vm122_vm1 = vcmp.ge.s32.totalorder %v121_v21, 64  ;;  %vm123_vm2 = vcmp.lt.s32.totalorder %v121_v21, 96  ;;  %s567_s3 = smov 96   ;;  %v25_v32 = vld [vmem:[%s999_s0 + $0x8] sm:$0xff] }
   0xe   :  { %136 = vmatpush.msra.mxu1 %v661_v9  ;;  %211 = vmatpush.msra.mxu3 %v652_v8  ;;  %vm830_vm3 = vmand %vm122_vm1, %vm123_vm2  ;;  %v26_v53 = vld [vmem:[%s999_s0 + $0x10] sm:$0xff]  ;;  %v447_v29 = vld [vmem:[%s1003_s4 + $0x68] sm:$0xff] }
   0xf   :  { %174 = vmatpush.msra.mxu2 %v661_v9  ;;  %360 = vmatpush.msrb.mxu0 %v620_v2 }
  0x10   :  { %137 = vmatpush.msra.mxu1 %v670_v10  ;;  %212 = vmatpush.msra.mxu3 %v661_v9 }
  0x11   :  { %175 = vmatpush.msra.mxu2 %v670_v10  ;;  %361 = vmatpush.msrb.mxu0 %v628_v3 }
  0x12   :  { %138 = vmatpush.msra.mxu1 %v679_v11  ;;  %213 = vmatpush.msra.mxu3 %v670_v10 }
  0x13   :  { %176 = vmatpush.msra.mxu2 %v679_v11  ;;  %362 = vmatpush.msrb.mxu0 %v644_v7 }
  0x14   :  { %139 = vmatpush.msra.mxu1 %v688_v12  ;;  %214 = vmatpush.msra.mxu3 %v679_v11 }
  0x15   :  { %177 = vmatpush.msra.mxu2 %v688_v12  ;;  %363 = vmatpush.msrb.mxu0 %v652_v8 }
  0x16   :  { %140 = vmatpush.msra.mxu1 %v697_v13  ;;  %215 = vmatpush.msra.mxu3 %v688_v12 }
  0x17   :  { %178 = vmatpush.msra.mxu2 %v697_v13  ;;  %364 = vmatpush.msrb.mxu0 %v661_v9 }
  0x18   :  { %141 = vmatpush.msra.mxu1 %v706_v14  ;;  %216 = vmatpush.msra.mxu3 %v697_v13 }
  0x19   :  { %179 = vmatpush.msra.mxu2 %v706_v14  ;;  %365 = vmatpush.msrb.mxu0 %v670_v10 }
  0x1a   :  { %142 = vmatpush.msra.mxu1 %v715_v15  ;;  %217 = vmatpush.msra.mxu3 %v706_v14 }
  0x1b   :  { %180 = vmatpush.msra.mxu2 %v715_v15  ;;  %366 = vmatpush.msrb.mxu0 %v679_v11 }
  0x1c   :  { %143 = vmatpush.msra.mxu1 %v724_v16  ;;  %218 = vmatpush.msra.mxu3 %v715_v15 }
  0x1d   :  { %181 = vmatpush.msra.mxu2 %v724_v16  ;;  %367 = vmatpush.msrb.mxu0 %v688_v12 }
  0x1e   :  { %144 = vmatpush.msra.mxu1 %v733_v17  ;;  %219 = vmatpush.msra.mxu3 %v724_v16 }
  0x1f   :  { %182 = vmatpush.msra.mxu2 %v733_v17  ;;  %368 = vmatpush.msrb.mxu0 %v697_v13 }
  0x20   :  { %145 = vmatpush.msra.mxu1 %v742_v18  ;;  %220 = vmatpush.msra.mxu3 %v733_v17 }
  0x21   :  { %146 = vmatmul.f32.vlgmr.msra.gmra.mxu1 %v565_v19  ;;  %183 = vmatpush.msra.mxu2 %v742_v18 }
  0x22   :  { %221 = vmatpush.msra.mxu3 %v742_v18  ;;  %244 = vmatpush.msrb.mxu1 %v608_v0 }
  0x23   :  { %282 = vmatpush.msrb.mxu2 %v608_v0  ;;  %369 = vmatpush.msrb.mxu0 %v706_v14 }
  0x24   :  { %320 = vmatpush.msrb.mxu3 %v608_v0  ;;  %245 = vmatpush.msrb.mxu1 %v613_v1 }
  0x25   :  { %283 = vmatpush.msrb.mxu2 %v613_v1  ;;  %370 = vmatpush.msrb.mxu0 %v715_v15 }
  0x26   :  { %321 = vmatpush.msrb.mxu3 %v613_v1  ;;  %246 = vmatpush.msrb.mxu1 %v620_v2 }
  0x27   :  { %284 = vmatpush.msrb.mxu2 %v620_v2  ;;  %371 = vmatpush.msrb.mxu0 %v724_v16 }
  0x28   :  { %322 = vmatpush.msrb.mxu3 %v620_v2  ;;  %247 = vmatpush.msrb.mxu1 %v628_v3 }
  0x29   :  { %285 = vmatpush.msrb.mxu2 %v628_v3  ;;  %372 = vmatpush.msrb.mxu0 %v733_v17 }
  0x2a   :  { %323 = vmatpush.msrb.mxu3 %v628_v3  ;;  %248 = vmatpush.msrb.mxu1 %v644_v7 }
  0x2b   :  { %286 = vmatpush.msrb.mxu2 %v644_v7  ;;  %373 = vmatpush.msrb.mxu0 %v742_v18 }
  0x2c   :  { %324 = vmatpush.msrb.mxu3 %v644_v7  ;;  %249 = vmatpush.msrb.mxu1 %v652_v8 }
  0x2d   :  { %287 = vmatpush.msrb.mxu2 %v652_v8  ;;  %125 = vrot.lane.b32.xlu0 %v121_v21, %s566_s2 }
  0x2e   :  { %325 = vmatpush.msrb.mxu3 %v652_v8  ;;  %250 = vmatpush.msrb.mxu1 %v661_v9 }
  0x2f   :  { %288 = vmatpush.msrb.mxu2 %v661_v9  ;;  %493 = vmatmul.msk.f32.gmra.mxu0 %vm38_vm0, %v25_v32 }
  0x30   :  { %326 = vmatpush.msrb.mxu3 %v661_v9  ;;  %251 = vmatpush.msrb.mxu1 %v670_v10 }
  0x31   :  { %289 = vmatpush.msrb.mxu2 %v670_v10 }
  0x32   :  { %327 = vmatpush.msrb.mxu3 %v670_v10  ;;  %252 = vmatpush.msrb.mxu1 %v679_v11 }
  0x33   :  { %290 = vmatpush.msrb.mxu2 %v679_v11 }
  0x34   :  { %328 = vmatpush.msrb.mxu3 %v679_v11  ;;  %253 = vmatpush.msrb.mxu1 %v688_v12 }
  0x35   :  { %291 = vmatpush.msrb.mxu2 %v688_v12 }
  0x36   :  { %329 = vmatpush.msrb.mxu3 %v688_v12  ;;  %254 = vmatpush.msrb.mxu1 %v697_v13 }
  0x37   :  { %292 = vmatpush.msrb.mxu2 %v697_v13  ;;  %494 = vmatmul.msk.f32.gmra.mxu0 %vm38_vm0, %v26_v53 }
  0x38   :  { %330 = vmatpush.msrb.mxu3 %v697_v13  ;;  %255 = vmatpush.msrb.mxu1 %v706_v14 }
  0x39   :  { %293 = vmatpush.msrb.mxu2 %v706_v14 }
  0x3a   :  { %331 = vmatpush.msrb.mxu3 %v706_v14  ;;  %256 = vmatpush.msrb.mxu1 %v715_v15 }
  0x3b   :  { %294 = vmatpush.msrb.mxu2 %v715_v15 }
  0x3c   :  { %332 = vmatpush.msrb.mxu3 %v715_v15  ;;  %257 = vmatpush.msrb.mxu1 %v724_v16 }
  0x3d   :  { %295 = vmatpush.msrb.mxu2 %v724_v16 }
  0x3e   :  { %333 = vmatpush.msrb.mxu3 %v724_v16  ;;  %258 = vmatpush.msrb.mxu1 %v733_v17 }
  0x3f   :  { %296 = vmatpush.msrb.mxu2 %v733_v17 }
  0x40   :  { %334 = vmatpush.msrb.mxu3 %v733_v17  ;;  %259 = vmatpush.msrb.mxu1 %v742_v18 }
  0x41   :  { %297 = vmatpush.msrb.mxu2 %v742_v18 }
  0x42   :  { %335 = vmatpush.msrb.mxu3 %v742_v18  ;;  %396 = vmatpush.msra.mxu1 %v608_v0 }
  0x44   :  { %397 = vmatpush.msra.mxu1 %v613_v1 }
  0x46   :  { %398 = vmatpush.msra.mxu1 %v620_v2 }
  0x48   :  { %399 = vmatpush.msra.mxu1 %v628_v3 }
  0x4a   :  { %400 = vmatpush.msra.mxu1 %v644_v7 }
  0x4c   :  { %401 = vmatpush.msra.mxu1 %v652_v8  ;;  %v27_v8 = vld [vmem:[%s999_s0 + $0x18] sm:$0xff] }
  0x4d   :  { %495 = vmatmul.msk.f32.gmra.mxu0 %vm38_vm0, %v27_v8 }
  0x4e   :  { %402 = vmatpush.msra.mxu1 %v661_v9 }
  0x50   :  { %403 = vmatpush.msra.mxu1 %v670_v10 }
  0x52   :  { %404 = vmatpush.msra.mxu1 %v679_v11 }
  0x54   :  { %405 = vmatpush.msra.mxu1 %v688_v12 }
  0x56   :  { %406 = vmatpush.msra.mxu1 %v697_v13 }
  0x58   :  { %407 = vmatpush.msra.mxu1 %v706_v14 }
  0x5a   :  { %408 = vmatpush.msra.mxu1 %v715_v15 }
  0x5c   :  { %409 = vmatpush.msra.mxu1 %v724_v16 }
  0x5e   :  { %410 = vmatpush.msra.mxu1 %v733_v17 }
  0x60   :  { %411 = vmatpush.msra.mxu1 %v742_v18 }
  0x86   :  { %v80_v23 = vpop.f32.mrf.mxu0 }
  0x87   :  { %v81_v24 = vadd.f32 %v827_v22, %v80_v23 }
  0x9e   :  { %v147_v25 = vpop.f32.mrf.mxu1 }
  0x9f   :  { %v150_v26 = vadd.f32 %v147_v25, %v81_v24  ;;  %v126_v33 = vpop.permute.xlu0 %125 }
  0xa0   :  { %vm127_vm4 = vcmp.ge.s32.totalorder %v126_v33, 32  ;;  %vm128_vm5 = vcmp.lt.s32.totalorder %v126_v33, 64 }
  0xa1   :  { %507 = vtanh.f32 %v150_v26  ;;  %vm843_vm6 = vmand %vm127_vm4, %vm128_vm5 }
  0xa7   :  { %v508_v27 = vpop.eup %507 }
  0xa8   :  { %v152_v28 = vmul.f32 0.5, %v508_v27 }
  0xaa   :  { %v153_v30 = vadd.f32 0.5, %v152_v28  ;;  %v28_v28 = vld [vmem:[%s999_s0 + $0x20] sm:$0xff] }
  0xab   :  { %496 = vmatmul.msk.f32.gmra.mxu0 %vm38_vm0, %v28_v28 }
  0xac   :  { %v154_v31 = vsel %vm830_vm3, %v508_v27, %v153_v30  ;;  %v83_v45 = vpop.f32.mrf.mxu0 }
  0xad   :  { %159 = vrot.lane.b32.xlu1 %v154_v31, %s567_s3  ;;  %157 = vrot.lane.b32.xlu0 %v154_v31, %s566_s2  ;;  %v84_v46 = vadd.f32 %v827_v22, %v83_v45 }
  0xb4   :  { %v86_v0 = vpop.f32.mrf.mxu0 }
  0xb5   :  { %155 = vrot.lane.b32.xlu1 %v154_v31, %s568_s12  ;;  %v87_v1 = vadd.f32 %v827_v22, %v86_v0 }
  0xca   :  { %v89_v19 = vpop.f32.mrf.mxu0 }
  0xcb   :  { %v90_v20 = vadd.f32 %v827_v22, %v89_v19 }
 0x11f   :  { %v160_v34 = vpop.permute.xlu1 %159  ;;  %v158_v36 = vpop.permute.xlu0 %157 }
 0x120   :  { %v161_v37 = vsel %vm843_vm6, %v158_v36, %v160_v34  ;;  %v162_v43 = vsel %vm843_vm6, %v160_v34, %v158_v36 }
 0x121   :  { %v163_v39 = vmul.f32 0.0, %v161_v37 }
 0x127   :  { %v156_v38 = vpop.permute.xlu1 %155 }
 0x128   :  { %v164_v40 = vmul.f32 %v156_v38, %v154_v31 }
 0x12a   :  { %v165_v41 = vadd.f32 %v164_v40, %v163_v39 }
 0x12c   :  { %509 = vtanh.f32 %v165_v41 }
 0x132   :  { %v510_v42 = vpop.eup %509 }
 0x133   :  { %v167_v44 = vmul.f32 %v510_v42, %v162_v43 }
 0x135   :  { %184 = vmatmul.f32.vlgmr.msra.gmra.mxu2 %v167_v44 }
 0x1b8   :  { %v185_v47 = vpop.f32.mrf.mxu2 }
 0x1b9   :  { %v188_v48 = vadd.f32 %v185_v47, %v84_v46 }
 0x1bb   :  { %511 = vtanh.f32 %v188_v48 }
 0x1c1   :  { %v512_v49 = vpop.eup %511 }
 0x1c2   :  { %v190_v50 = vmul.f32 0.5, %v512_v49 }
 0x1c4   :  { %v191_v51 = vadd.f32 0.5, %v190_v50 }
 0x1c6   :  { %v192_v52 = vsel %vm830_vm3, %v512_v49, %v191_v51  ;;  %v29_v49 = vld [vmem:[%s999_s0 + $0x28] sm:$0xff] }
 0x1c7   :  { %193 = vrot.lane.b32.xlu0 %v192_v52, %s568_s12  ;;  %195 = vrot.lane.b32.xlu2 %v192_v52, %s566_s2 }
 0x1c8   :  { %497 = vmatmul.msk.f32.gmra.mxu0 %vm38_vm0, %v29_v49  ;;  %v443_v49 = vld [vmem:[%s1003_s4 + $0x48] sm:$0xff] }
 0x1cf   :  { %197 = vrot.lane.b32.xlu2 %v192_v52, %s567_s3 }
 0x221   :  { %v196_v54 = vpop.permute.xlu2 %195 }
 0x229   :  { %v198_v55 = vpop.permute.xlu2 %197 }
 0x22a   :  { %v199_v56 = vsel %vm843_vm6, %v196_v54, %v198_v55  ;;  %v200_v62 = vsel %vm843_vm6, %v198_v55, %v196_v54 }
 0x22b   :  { %v201_v58 = vmul.f32 %v199_v56, %v165_v41  ;;  %v92_v41 = vpop.f32.mrf.mxu0 }
 0x22c   :  { %v93_v42 = vadd.f32 %v827_v22, %v92_v41 }
 0x239   :  { %v194_v57 = vpop.permute.xlu0 %193 }
 0x23a   :  { %v202_v59 = vmul.f32 %v194_v57, %v192_v52 }
 0x23c   :  { %v203_v60 = vadd.f32 %v202_v59, %v201_v58 }
 0x23e   :  { %513 = vtanh.f32 %v203_v60 }
 0x244   :  { %v514_v61 = vpop.eup %513 }
 0x245   :  { %v205_v63 = vmul.f32 %v514_v61, %v200_v62 }
 0x247   :  { %222 = vmatmul.f32.vlgmr.msra.gmra.mxu3 %v205_v63 }
 0x2ca   :  { %v223_v2 = vpop.f32.mrf.mxu3 }
 0x2cb   :  { %v226_v3 = vadd.f32 %v223_v2, %v87_v1 }
 0x2cd   :  { %515 = vtanh.f32 %v226_v3 }
 0x2d3   :  { %v516_v4 = vpop.eup %515 }
 0x2d4   :  { %v228_v5 = vmul.f32 0.5, %v516_v4 }
 0x2d6   :  { %v229_v6 = vadd.f32 0.5, %v228_v5  ;;  %v31_v5 = vld [vmem:[%s999_s0 + $0x38] sm:$0xff] }
 0x2d8   :  { %v230_v7 = vsel %vm830_vm3, %v516_v4, %v229_v6  ;;  %v30_v4 = vld [vmem:[%s999_s0 + $0x30] sm:$0xff] }
 0x2d9   :  { %231 = vrot.lane.b32.xlu0 %v230_v7, %s568_s12  ;;  %235 = vrot.lane.b32.xlu2 %v230_v7, %s567_s3 }
 0x2da   :  { %233 = vrot.lane.b32.xlu1 %v230_v7, %s566_s2  ;;  %498 = vmatmul.msk.f32.gmra.mxu0 %vm38_vm0, %v30_v4 }
 0x2e2   :  { %499 = vmatmul.msk.f32.gmra.mxu0 %vm38_vm0, %v31_v5  ;;  %v506_v5 = vld [vmem:[%s1004_s5] ss:$0 sm:$0xff] }
 0x333   :  { %v236_v10 = vpop.permute.xlu2 %235 }
 0x34b   :  { %v232_v9 = vpop.permute.xlu0 %231 }
 0x34c   :  { %v240_v11 = vmul.f32 %v232_v9, %v230_v7  ;;  %v234_v12 = vpop.permute.xlu1 %233 }
 0x34d   :  { %v237_v13 = vsel %vm843_vm6, %v234_v12, %v236_v10  ;;  %v238_v17 = vsel %vm843_vm6, %v236_v10, %v234_v12 }
 0x34e   :  { %v239_v14 = vmul.f32 %v237_v13, %v203_v60  ;;  %v95_v60 = vpop.f32.mrf.mxu0 }
 0x34f   :  { %v96_v61 = vadd.f32 %v827_v22, %v95_v60 }
 0x350   :  { %v241_v15 = vadd.f32 %v240_v11, %v239_v14 }
 0x352   :  { %517 = vtanh.f32 %v241_v15 }
 0x358   :  { %v518_v16 = vpop.eup %517 }
 0x359   :  { %v243_v18 = vmul.f32 %v518_v16, %v238_v17  ;;  %v98_v16 = vpop.f32.mrf.mxu0 }
 0x35b   :  { %260 = vmatmul.f32.vlgmr.msrb.gmra.mxu1 %v243_v18  ;;  %v99_v18 = vadd.f32 %v827_v22, %v98_v16 }
 0x361   :  { %v101_v17 = vpop.f32.mrf.mxu0 }
 0x3d8   :  { %v261_v21 = vpop.f32.mrf.mxu1 }
 0x3d9   :  { %v264_v23 = vadd.f32 %v261_v21, %v90_v20 }
 0x3db   :  { %519 = vtanh.f32 %v264_v23 }
 0x3e1   :  { %v520_v24 = vpop.eup %519 }
 0x3e2   :  { %v266_v25 = vmul.f32 0.5, %v520_v24 }
 0x3e4   :  { %v267_v26 = vadd.f32 0.5, %v266_v25 }
 0x3e6   :  { %v268_v27 = vsel %vm830_vm3, %v520_v24, %v267_v26 }
 0x3e7   :  { %269 = vrot.lane.b32.xlu0 %v268_v27, %s568_s12  ;;  %273 = vrot.lane.b32.xlu2 %v268_v27, %s567_s3 }
 0x3e8   :  { %271 = vrot.lane.b32.xlu1 %v268_v27, %s566_s2 }
 0x441   :  { %v274_v31 = vpop.permute.xlu2 %273 }
 0x459   :  { %v270_v30 = vpop.permute.xlu0 %269 }
 0x45a   :  { %v278_v32 = vmul.f32 %v270_v30, %v268_v27  ;;  %v272_v33 = vpop.permute.xlu1 %271 }
 0x45b   :  { %v275_v34 = vsel %vm843_vm6, %v272_v33, %v274_v31  ;;  %v276_v39 = vsel %vm843_vm6, %v274_v31, %v272_v33 }
 0x45c   :  { %v277_v36 = vmul.f32 %v275_v34, %v241_v15 }
 0x45e   :  { %v279_v37 = vadd.f32 %v278_v32, %v277_v36 }
 0x460   :  { %521 = vtanh.f32 %v279_v37 }
 0x466   :  { %v522_v38 = vpop.eup %521 }
 0x467   :  { %v281_v40 = vmul.f32 %v522_v38, %v276_v39  ;;  %v102_v38 = vadd.f32 %v827_v22, %v101_v17  ;;  %v448_v22 = vld [vmem:[%s1003_s4 + $0x70] sm:$0xff] }
 0x469   :  { %298 = vmatmul.f32.vlgmr.msrb.gmra.mxu2 %v281_v40 }
 0x4ec   :  { %v299_v43 = vpop.f32.mrf.mxu2 }
 0x4ed   :  { %v302_v44 = vadd.f32 %v299_v43, %v93_v42 }
 0x4ef   :  { %523 = vtanh.f32 %v302_v44 }
 0x4f5   :  { %v524_v45 = vpop.eup %523 }
 0x4f6   :  { %v304_v46 = vmul.f32 0.5, %v524_v45 }
 0x4f8   :  { %v305_v47 = vadd.f32 0.5, %v304_v46  ;;  %v446_v46 = vld [vmem:[%s1003_s4 + $0x60] sm:$0xff] }
 0x4fa   :  { %v306_v48 = vsel %vm830_vm3, %v524_v45, %v305_v47  ;;  %v449_v45 = vld [vmem:[%s1003_s4 + $0x78] sm:$0xff] }
 0x4fb   :  { %307 = vrot.lane.b32.xlu0 %v306_v48, %s568_s12  ;;  %311 = vrot.lane.b32.xlu2 %v306_v48, %s567_s3  ;;  %v445_v47 = vld [vmem:[%s1003_s4 + $0x58] sm:$0xff] }
 0x4fc   :  { %309 = vrot.lane.b32.xlu1 %v306_v48, %s566_s2  ;;  %454 = vmatpush.msra.mxu2 %v449_v45 }
 0x4fe   :  { %455 = vmatpush.msra.mxu2 %v448_v22 }
 0x500   :  { %456 = vmatpush.msra.mxu2 %v447_v29 }
 0x502   :  { %457 = vmatpush.msra.mxu2 %v446_v46 }
 0x504   :  { %458 = vmatpush.msra.mxu2 %v445_v47 }
 0x555   :  { %v312_v51 = vpop.permute.xlu2 %311 }
 0x56d   :  { %v308_v50 = vpop.permute.xlu0 %307 }
 0x56e   :  { %v316_v52 = vmul.f32 %v308_v50, %v306_v48  ;;  %v310_v53 = vpop.permute.xlu1 %309  ;;  %v444_v48 = vld [vmem:[%s1003_s4 + $0x50] sm:$0xff]  ;;  %v442_v50 = vld [vmem:[%s1003_s4 + $0x40] sm:$0xff] }
 0x56f   :  { %v313_v54 = vsel %vm843_vm6, %v310_v53, %v312_v51  ;;  %v314_v58 = vsel %vm843_vm6, %v312_v51, %v310_v53  ;;  %459 = vmatpush.msra.mxu2 %v444_v48  ;;  %v441_v51 = vld [vmem:[%s1003_s4 + $0x38] sm:$0xff]  ;;  %v439_v53 = vld [vmem:[%s1003_s4 + $0x28] sm:$0xff] }
 0x570   :  { %v315_v55 = vmul.f32 %v313_v54, %v279_v37  ;;  %v438_v54 = vld [vmem:[%s1003_s4 + $0x20] sm:$0xff] }
 0x571   :  { %460 = vmatpush.msra.mxu2 %v443_v49 }
 0x572   :  { %v317_v56 = vadd.f32 %v316_v52, %v315_v55  ;;  %v440_v52 = vld [vmem:[%s1003_s4 + $0x30] sm:$0xff]  ;;  %v437_v55 = vld [vmem:[%s1003_s4 + $0x18] sm:$0xff] }
 0x573   :  { %461 = vmatpush.msra.mxu2 %v442_v50 }
 0x574   :  { %525 = vtanh.f32 %v317_v56 }
 0x575   :  { %462 = vmatpush.msra.mxu2 %v441_v51 }
 0x577   :  { %463 = vmatpush.msra.mxu2 %v440_v52 }
 0x579   :  { %464 = vmatpush.msra.mxu2 %v439_v53 }
 0x57a   :  { %v526_v57 = vpop.eup %525 }
 0x57b   :  { %v319_v59 = vmul.f32 %v526_v57, %v314_v58  ;;  %465 = vmatpush.msra.mxu2 %v438_v54  ;;  %v435_v57 = vld [vmem:[%s1003_s4 + $0x8] sm:$0xff]  ;;  %v434_v58 = vld [vmem:[%s1003_s4] sm:$0xff] }
 0x57d   :  { %336 = vmatmul.f32.vlgmr.msrb.gmra.mxu3 %v319_v59  ;;  %466 = vmatpush.msra.mxu2 %v437_v55 }
 0x600   :  { %v337_v62 = vpop.f32.mrf.mxu3 }
 0x601   :  { %v340_v63 = vadd.f32 %v337_v62, %v96_v61 }
 0x603   :  { %527 = vtanh.f32 %v340_v63 }
 0x609   :  { %v528_v0 = vpop.eup %527 }
 0x60a   :  { %v342_v1 = vmul.f32 0.5, %v528_v0 }
 0x60c   :  { %v343_v2 = vadd.f32 0.5, %v342_v1 }
 0x60e   :  { %v344_v3 = vsel %vm830_vm3, %v528_v0, %v343_v2 }
 0x60f   :  { %345 = vrot.lane.b32.xlu0 %v344_v3, %s568_s12  ;;  %349 = vrot.lane.b32.xlu2 %v344_v3, %s567_s3 }
 0x610   :  { %347 = vrot.lane.b32.xlu1 %v344_v3, %s566_s2 }
 0x669   :  { %v350_v7 = vpop.permute.xlu2 %349 }
 0x681   :  { %v346_v6 = vpop.permute.xlu0 %345 }
 0x682   :  { %v354_v8 = vmul.f32 %v346_v6, %v344_v3  ;;  %v348_v9 = vpop.permute.xlu1 %347 }
 0x683   :  { %v351_v10 = vsel %vm843_vm6, %v348_v9, %v350_v7  ;;  %v352_v14 = vsel %vm843_vm6, %v350_v7, %v348_v9 }
 0x684   :  { %v353_v11 = vmul.f32 %v351_v10, %v317_v56  ;;  %v436_v56 = vld [vmem:[%s1003_s4 + $0x10] sm:$0xff]  ;;  %s569_s4 = smov [#allocation2]  }
 0x685   :  { %467 = vmatpush.msra.mxu2 %v436_v56  ;;  %s481_s7 = sshll.u32 %s569_s4, 4  ;;  %s482_s7 = int_to_ptr.vmem [resolvable:$true] %s481_s7 }
 0x686   :  { %v355_v12 = vadd.f32 %v354_v8, %v353_v11 }
 0x687   :  { %468 = vmatpush.msra.mxu2 %v435_v57 }
 0x688   :  { %529 = vtanh.f32 %v355_v12 }
 0x689   :  { %469 = vmatpush.msra.mxu2 %v434_v58 }
 0x68e   :  { %v530_v13 = vpop.eup %529 }
 0x68f   :  { %v357_v15 = vmul.f32 %v530_v13, %v352_v14 }
 0x691   :  { %374 = vmatmul.f32.vlgmr.msrb.gmra.mxu0 %v357_v15 }
 0x70e   :  { %v375_v19 = vpop.f32.mrf.mxu0 }
 0x70f   :  { %v378_v20 = vadd.f32 %v375_v19, %v99_v18 }
 0x711   :  { %531 = vtanh.f32 %v378_v20 }
 0x717   :  { %v532_v21 = vpop.eup %531 }
 0x718   :  { %v380_v23 = vmul.f32 0.5, %v532_v21 }
 0x71a   :  { %v381_v24 = vadd.f32 0.5, %v380_v23 }
 0x71c   :  { %v382_v25 = vsel %vm830_vm3, %v532_v21, %v381_v24 }
 0x71d   :  { %383 = vrot.lane.b32.xlu0 %v382_v25, %s568_s12  ;;  %387 = vrot.lane.b32.xlu2 %v382_v25, %s567_s3 }
 0x71e   :  { %385 = vrot.lane.b32.xlu1 %v382_v25, %s566_s2 }
 0x777   :  { %v388_v27 = vpop.permute.xlu2 %387 }
 0x78f   :  { %v384_v26 = vpop.permute.xlu0 %383 }
 0x790   :  { %v392_v28 = vmul.f32 %v384_v26, %v382_v25  ;;  %v386_v30 = vpop.permute.xlu1 %385 }
 0x791   :  { %v389_v31 = vsel %vm843_vm6, %v386_v30, %v388_v27  ;;  %v390_v36 = vsel %vm843_vm6, %v388_v27, %v386_v30 }
 0x792   :  { %v391_v32 = vmul.f32 %v389_v31, %v355_v12 }
 0x794   :  { %v393_v33 = vadd.f32 %v392_v28, %v391_v32 }
 0x796   :  { %533 = vtanh.f32 %v393_v33 }
 0x79c   :  { %v534_v34 = vpop.eup %533 }
 0x79d   :  { %v395_v37 = vmul.f32 %v534_v34, %v390_v36 }
 0x79f   :  { %412 = vmatmul.f32.vlgmr.msra.gmra.mxu1 %v395_v37 }
 0x81c   :  { %v413_v39 = vpop.f32.mrf.mxu1 }
 0x81d   :  { %v416_v40 = vadd.f32 %v413_v39, %v102_v38 }
 0x81f   :  { %535 = vtanh.f32 %v416_v40 }
 0x825   :  { %v536_v41 = vpop.eup %535 }
 0x826   :  { %v418_v42 = vmul.f32 0.5, %v536_v41 }
 0x828   :  { %v419_v43 = vadd.f32 0.5, %v418_v42 }
 0x82a   :  { %v420_v44 = vsel %vm830_vm3, %v536_v41, %v419_v43 }
 0x82b   :  { %421 = vrot.lane.b32.xlu0 %v420_v44, %s568_s12  ;;  %425 = vrot.lane.b32.xlu2 %v420_v44, %s567_s3 }
 0x82c   :  { %423 = vrot.lane.b32.xlu1 %v420_v44, %s566_s2  ;;  %s483_s2 = sshll.u32 %s1005_s6, 4  ;;  %s484_s2 = int_to_ptr.hbm [resolvable:$true] %s483_s2 }
 0x885   :  { %v426_v60 = vpop.permute.xlu2 %425 }
 0x89d   :  { %v422_v59 = vpop.permute.xlu0 %421 }
 0x89e   :  { %v430_v61 = vmul.f32 %v422_v59, %v420_v44  ;;  %v424_v62 = vpop.permute.xlu1 %423 }
 0x89f   :  { %v427_v63 = vsel %vm843_vm6, %v424_v62, %v426_v60  ;;  %v428_v3 = vsel %vm843_vm6, %v426_v60, %v424_v62 }
 0x8a0   :  { %v429_v0 = vmul.f32 %v427_v63, %v393_v33 }
 0x8a2   :  { %v431_v1 = vadd.f32 %v430_v61, %v429_v0 }
 0x8a4   :  { %537 = vtanh.f32 %v431_v1 }
 0x8aa   :  { %v538_v2 = vpop.eup %537 }
 0x8ab   :  { %v433_v4 = vmul.f32 %v538_v2, %v428_v3 }
 0x8ad   :  { %470 = vmatmul.f32.vlgmr.msra.gmra.mxu2 %v433_v4 }
 0x930   :  { %v471_v6 = vpop.f32.mrf.mxu2 }
 0x931   :  { %v472_v7 = vadd.f32 %v506_v5, %v471_v6 }
 0x933   :  { %475 = vst.msk [vmem:[#allocation2] sm:$0xff] %vm474_vm7, %v472_v7 }
 0x934   :  { %486 = dma.vmem_to_hbm [thread:$0]  %s482_s7, 128, %s484_s2, [#allocation3]  }
 0x935   :  { %563 = dma.done.wait [#allocation3], 128  }
 0x936   :  { %564 = vsyncadd [#allocation3], 4294967168 }
 0x937   :  { %491 = vsyncpa [#allocation3], 1 }

</bundles_post_ra>
